<compile_context>
chip_gen: v7x
topology: tpu7x:2x2x1
jax: 0.10.0
libtpu: 0.0.40
codegen_flags: <defaults>
</compile_context>

<pallas_src>
import jax
import jax.numpy as jnp
from jax.experimental import pallas as pl
from jax.experimental.pallas import tpu as pltpu

EPS = 1e-5


# ---------------------------------------------------------------------------
# Pallas kernels
# ---------------------------------------------------------------------------
def _conv_stats_kernel(patches_ref, w_ref, conv_ref, sum_ref, ssq_ref):
    """One M-tile of conv = W @ P plus accumulated per-channel sum / sumsq.

    patches_ref: (K, Mt)          w_ref:   (Cout, K)
    conv_ref:    (Cout, Mt) f32   sum_ref / ssq_ref: (Cout, 1) f32
    sum/ssq use a constant index_map -> VMEM-resident accumulators across the
    (arbitrary) M grid axis, initialized at step 0.
    """
    acc = jnp.dot(w_ref[...], patches_ref[...],
                  preferred_element_type=jnp.float32)
    conv_ref[...] = acc

    @pl.when(pl.program_id(0) == 0)
    def _():
        sum_ref[...] = jnp.zeros_like(sum_ref)
        ssq_ref[...] = jnp.zeros_like(ssq_ref)

    sum_ref[...] += jnp.sum(acc, axis=1, keepdims=True)
    ssq_ref[...] += jnp.sum(acc * acc, axis=1, keepdims=True)


def _bn_relu_kernel(conv_ref, scale_ref, shift_ref, o_ref):
    y = conv_ref[...] * scale_ref[...] + shift_ref[...]
    o_ref[...] = jnp.maximum(y, 0.0).astype(o_ref.dtype)


def _bn_add_relu_kernel(conv_ref, scale_ref, shift_ref, res_ref, o_ref):
    y = conv_ref[...] * scale_ref[...] + shift_ref[...]
    o_ref[...] = jnp.maximum(y + res_ref[...], 0.0).astype(o_ref.dtype)


def _bn_bnds_add_relu_kernel(conv_ref, scale_ref, shift_ref,
                             convds_ref, scaleds_ref, shiftds_ref, o_ref):
    y = conv_ref[...] * scale_ref[...] + shift_ref[...]
    r = convds_ref[...] * scaleds_ref[...] + shiftds_ref[...]
    o_ref[...] = jnp.maximum(y + r, 0.0).astype(o_ref.dtype)


# ---------------------------------------------------------------------------
# pallas_call wrappers
# ---------------------------------------------------------------------------
def _round_up(a, b):
    return -(-a // b) * b


def _pad_m(a, mp):
    pad = mp - a.shape[-1]
    if pad == 0:
        return a
    return jnp.pad(a, ((0, 0), (0, pad)))


def _pick_m_tile(kdim, cout, in_itemsize, m, budget_bytes=8 << 20):
    """Largest lane-dense (multiple of 128) M tile whose double-buffered
    working set fits an ~8 MiB per-step budget (conservative for v7x)."""
    per_col = 2 * (kdim * in_itemsize + cout * 4) + cout * 4
    t = budget_bytes // max(per_col, 1)
    t = max(128, min(2048, (t // 128) * 128))
    return int(min(t, _round_up(m, 128)))


def _compiler_params(semantics, vmem_bytes):
    return pltpu.CompilerParams(
        dimension_semantics=semantics,
        vmem_limit_bytes=int(min(max(vmem_bytes, 32 << 20), 100 << 20)),
    )


def _conv_stats(patches, w, m_tile):
    """patches (K, Mp), w (Cout, K) -> conv (Cout, Mp) f32, sum, sumsq (Cout, 1)."""
    kdim, mp = patches.shape
    cout = w.shape[0]
    m_tiles = mp // m_tile
    itm_in = patches.dtype.itemsize

    vmem = (2 * (kdim * m_tile * itm_in + cout * m_tile * 4)
            + cout * kdim * w.dtype.itemsize + 4 * cout * 4 + (2 << 20))
    bytes_accessed = (patches.size * itm_in + w.size * w.dtype.itemsize
                      + cout * mp * 4 + 2 * cout * 4)

    return pl.pallas_call(
        _conv_stats_kernel,
        grid=(m_tiles,),
        in_specs=[
            pl.BlockSpec((kdim, m_tile), lambda i: (0, i)),
            pl.BlockSpec((cout, kdim), lambda i: (0, 0)),
        ],
        out_specs=(
            pl.BlockSpec((cout, m_tile), lambda i: (0, i)),
            pl.BlockSpec((cout, 1), lambda i: (0, 0)),
            pl.BlockSpec((cout, 1), lambda i: (0, 0)),
        ),
        out_shape=(
            jax.ShapeDtypeStruct((cout, mp), jnp.float32),
            jax.ShapeDtypeStruct((cout, 1), jnp.float32),
            jax.ShapeDtypeStruct((cout, 1), jnp.float32),
        ),
        compiler_params=_compiler_params(("arbitrary",), vmem),
        cost_estimate=pl.CostEstimate(
            flops=2 * kdim * cout * mp,
            transcendentals=0,
            bytes_accessed=int(bytes_accessed)),
    )(patches, w)


def _bn_apply(kernel, args, out_dtype, m_tile):
    """args: list of (array, is_tiled). Tiled arrays are (C, Mp); small (C, 1)."""
    cout, mp = args[0][0].shape
    m_tiles = mp // m_tile

    in_specs, tile_bytes, bytes_accessed = [], 0, 0
    for arr, tiled in args:
        bytes_accessed += arr.size * arr.dtype.itemsize
        if tiled:
            in_specs.append(pl.BlockSpec((arr.shape[0], m_tile),
                                         lambda i: (0, i)))
            tile_bytes += arr.shape[0] * m_tile * arr.dtype.itemsize
        else:
            in_specs.append(pl.BlockSpec(arr.shape, lambda i: (0, 0)))
    out_itm = jnp.dtype(out_dtype).itemsize
    tile_bytes += cout * m_tile * out_itm
    bytes_accessed += cout * mp * out_itm

    return pl.pallas_call(
        kernel,
        grid=(m_tiles,),
        in_specs=in_specs,
        out_specs=pl.BlockSpec((cout, m_tile), lambda i: (0, i)),
        out_shape=jax.ShapeDtypeStruct((cout, mp), out_dtype),
        compiler_params=_compiler_params(("parallel",),
                                         2 * tile_bytes + (2 << 20)),
        cost_estimate=pl.CostEstimate(
            flops=4 * cout * mp,
            transcendentals=0,
            bytes_accessed=int(bytes_accessed)),
    )(*(a for a, _ in args))


# ---------------------------------------------------------------------------
# JAX glue: channel-major im2col for 3D conv, fused into the contraction dim
# ---------------------------------------------------------------------------
def _im2col(x_cndhw, ksize, stride, pad, dtype):
    """x: (C, N, D, H, W) -> patches (C*ksize^3, M), M = N*Do*Ho*Wo.

    Row order matches w.reshape(Cout, C*ksize^3): row = ci*ksize^3 + tap.
    """
    C, N, D, H, W = x_cndhw.shape
    xp = jnp.pad(x_cndhw,
                 ((0, 0), (0, 0), (pad, pad), (pad, pad), (pad, pad)))
    Do = (D + 2 * pad - ksize) // stride + 1
    Ho = (H + 2 * pad - ksize) // stride + 1
    Wo = (W + 2 * pad - ksize) // stride + 1
    taps = []
    for kd in range(ksize):
        for kh in range(ksize):
            for kw in range(ksize):
                sl = xp[:, :,
                        kd:kd + Do * stride:stride,
                        kh:kh + Ho * stride:stride,
                        kw:kw + Wo * stride:stride]
                taps.append(sl.reshape(C, N * Do * Ho * Wo))
    patches = jnp.stack(taps, axis=1).reshape(C * ksize ** 3, -1)
    return patches.astype(dtype), (Do, Ho, Wo)


def _bn_scale_shift(csum, cssq, gamma, beta, m):
    """Fold training-mode batch stats + affine into per-channel scale/shift."""
    mean = csum[:, 0] / m
    var = jnp.maximum(cssq[:, 0] / m - mean * mean, 0.0)   # biased variance
    scale = gamma * jax.lax.rsqrt(var + EPS)
    shift = beta - mean * scale
    return (scale.reshape(-1, 1).astype(jnp.float32),
            shift.reshape(-1, 1).astype(jnp.float32))


# ---------------------------------------------------------------------------
# ResBlock forward (Pallas)
# ---------------------------------------------------------------------------
def resblock_forward(x_ncdhw, params, *, m_tile=None,
                     compute_dtype=jnp.bfloat16):
    w1, g1, b1 = params["w1"], params["g1"], params["b1"]
    w2, g2, b2 = params["w2"], params["g2"], params["b2"]
    stride = params["stride"]
    Cout, Cin = w1.shape[0], w1.shape[1]
    has_ds = (stride != 1) or (Cin != Cout)

    x = jnp.transpose(x_ncdhw.astype(jnp.float32), (1, 0, 2, 3, 4))  # (C,N,D,H,W)
    _, N, D, H, W = x.shape

    # ---- stage 1: conv1 (3x3x3, stride) -> BN1 -> ReLU ----
    patches1, (Do, Ho, Wo) = _im2col(x, 3, stride, 1, compute_dtype)
    M = N * Do * Ho * Wo
    if m_tile is None:
        m_tile = _pick_m_tile(27 * max(Cin, Cout), Cout,
                              jnp.dtype(compute_dtype).itemsize, M)
    m_tile = int(min(m_tile, _round_up(M, 128)))
    Mp = _round_up(M, m_tile)

    w1_flat = w1.reshape(Cout, Cin * 27).astype(compute_dtype)
    conv1, s1, q1 = _conv_stats(_pad_m(patches1, Mp), w1_flat, m_tile)
    sc1, sh1 = _bn_scale_shift(s1, q1, g1, b1, M)
    y1 = _bn_apply(_bn_relu_kernel,
                   [(conv1, True), (sc1, False), (sh1, False)],
                   compute_dtype, m_tile)

    # ---- stage 2: conv2 (3x3x3, s=1) -> BN2 -> (+residual) -> ReLU ----
    y1_sp = y1[:, :M].reshape(Cout, N, Do, Ho, Wo)
    patches2, _ = _im2col(y1_sp, 3, 1, 1, compute_dtype)
    w2_flat = w2.reshape(Cout, Cout * 27).astype(compute_dtype)
    conv2, s2, q2 = _conv_stats(_pad_m(patches2, Mp), w2_flat, m_tile)
    sc2, sh2 = _bn_scale_shift(s2, q2, g2, b2, M)

    if has_ds:
        # downsample: 1x1 conv (stride) + BN; kept in f32 (tiny K, residual path).
        x_s = x[:, :, ::stride, ::stride, ::stride].reshape(Cin, M)
        wds = params["wds"].reshape(Cout, Cin)
        convd, sd, qd = _conv_stats(_pad_m(x_s, Mp), wds, m_tile)
        scd, shd = _bn_scale_shift(sd, qd, params["gds"], params["bds"], M)
        out = _bn_apply(_bn_bnds_add_relu_kernel,
                        [(conv2, True), (sc2, False), (sh2, False),
                         (convd, True), (scd, False), (shd, False)],
                        jnp.float32, m_tile)
    else:
        res = _pad_m(x.reshape(Cin, M), Mp)
        out = _bn_apply(_bn_add_relu_kernel,
                        [(conv2, True), (sc2, False), (sh2, False),
                         (res, True)],
                        jnp.float32, m_tile)

    out = out[:, :M].reshape(Cout, N, Do, Ho, Wo)
    return jnp.transpose(out, (1, 0, 2, 3, 4))  # NCDHW


# ---------------------------------------------------------------------------
# Deterministic parameter init (PyTorch module shapes) + pure-JAX reference
# ---------------------------------------------------------------------------
def init_params(key, in_channels, out_channels, stride):
    ks = jax.random.split(key, 8)

    def conv_w(k, co, ci, ksz):
        fan_in = ci * ksz ** 3
        bound = (1.0 / fan_in) ** 0.5
        return jax.random.uniform(k, (co, ci, ksz, ksz, ksz),
                                  jnp.float32, -bound, bound)

    p = {
        "stride": stride,
        "w1": conv_w(ks[0], out_channels, in_channels, 3),
        "g1": 1.0 + 0.1 * jax.random.normal(ks[1], (out_channels,), jnp.float32),
        "b1": 0.1 * jax.random.normal(ks[2], (out_channels,), jnp.float32),
        "w2": conv_w(ks[3], out_channels, out_channels, 3),
        "g2": 1.0 + 0.1 * jax.random.normal(ks[4], (out_channels,), jnp.float32),
        "b2": 0.1 * jax.random.normal(ks[5], (out_channels,), jnp.float32),
    }
    if stride != 1 or in_channels != out_channels:
        p["wds"] = conv_w(ks[6], out_channels, in_channels, 1)
        p["gds"] = jnp.ones((out_channels,), jnp.float32)
        p["bds"] = 0.1 * jax.random.normal(ks[7], (out_channels,), jnp.float32)
    return p


def resblock_reference(x, params):
    dn = ("NCDHW", "OIDHW", "NCDHW")
    stride = params["stride"]

    def conv(x, w, s, pad):
        return jax.lax.conv_general_dilated(
            x, w, (s, s, s), [(pad, pad)] * 3, dimension_numbers=dn)

    def bn(y, g, b):
        mean = y.mean(axis=(0, 2, 3, 4), keepdims=True)
        var = y.var(axis=(0, 2, 3, 4), keepdims=True)  # biased, training-mode
        return ((y - mean) / jnp.sqrt(var + EPS) * g.reshape(1, -1, 1, 1, 1)
                + b.reshape(1, -1, 1, 1, 1))

    out = jax.nn.relu(bn(conv(x, params["w1"], stride, 1),
                         params["g1"], params["b1"]))
    out = bn(conv(out, params["w2"], 1, 1), params["g2"], params["b2"])
    if "wds" in params:
        res = bn(conv(x, params["wds"], stride, 0),
                 params["gds"], params["bds"])
    else:
        res = x
    return jax.nn.relu(out + res)


if __name__ == "__main__":
    key = jax.random.PRNGKey(0)
    kx, kp = jax.random.split(key)

    N, Cin, Cout, D = 2, 4, 8, 8
    stride = 1  # Cin != Cout -> downsample (1x1 conv + BN) path is active
    x = jax.random.normal(kx, (N, Cin, D, D, D), jnp.float32)
    params = init_params(kp, Cin, Cout, stride)

    # m_tile=512 -> 2 M-tiles at this toy size, exercising the cross-tile
    # BatchNorm stats accumulation; leave m_tile=None in production to
    # auto-size the tile from the per-step VMEM budget.
    out = jax.block_until_ready(resblock_forward(x, params, m_tile=512))
    ref = jax.block_until_ready(resblock_reference(x, params))

    assert out.shape == ref.shape, (out.shape, ref.shape)
    max_err = float(jnp.max(jnp.abs(out - ref)))
    # bf16 matmul operands (per perf guidance) -> ~1e-2-scale absolute error
    # vs. the pure-f32 reference after two conv+BN stages; epilogue is f32.
    if max_err < 5e-2:
        print("KERNEL_OK")
    else:
        print(f"MISMATCH max_abs_err={max_err}")
</pallas_src>

<mosaic_0001>
module attributes {stable_mosaic.version = 11 : i64} {
  func.func @_conv_stats_kernel(%arg0: i32, %arg1: memref<108x512xbf16, #tpu.memory_space<vmem>>, %arg2: memref<8x108xbf16, #tpu.memory_space<vmem>>, %arg3: memref<8x512xf32, #tpu.memory_space<vmem>>, %arg4: memref<8x1xf32, #tpu.memory_space<vmem>>, %arg5: memref<8x1xf32, #tpu.memory_space<vmem>>) attributes {dimension_semantics = [#tpu.dimension_semantics<arbitrary>], iteration_bounds = array<i64: 2>, scalar_prefetch = 0 : i64, scratch_operands = 0 : i64, tpu.core_type = #tpu.core_type<tc>, window_params = [{transform_indices = @transform_0, window_bounds = array<i64: 108, 512>}, {pipeline_mode = #tpu.pipeline_mode<synchronous>, transform_indices = @transform_1, window_bounds = array<i64: 8, 108>}, {transform_indices = @transform_2, window_bounds = array<i64: 8, 512>}, {pipeline_mode = #tpu.pipeline_mode<synchronous>, transform_indices = @transform_3, window_bounds = array<i64: 8, 1>}, {pipeline_mode = #tpu.pipeline_mode<synchronous>, transform_indices = @transform_4, window_bounds = array<i64: 8, 1>}]} {
    %c0 = arith.constant 0 : index
    %c0_0 = arith.constant 0 : index
    %0 = vector.load %arg2[%c0, %c0_0] : memref<8x108xbf16, #tpu.memory_space<vmem>>, vector<8x108xbf16>
    %c0_1 = arith.constant 0 : index
    %c0_2 = arith.constant 0 : index
    %1 = vector.load %arg1[%c0_1, %c0_2] : memref<108x512xbf16, #tpu.memory_space<vmem>>, vector<108x512xbf16>
    %cst = arith.constant dense<0.000000e+00> : vector<8x512xf32>
    %2 = tpu.matmul %0, %1, %cst {dimension_numbers = #tpu.dot_dimension_numbers<[1], [0], [0], [1], [0, 0, 1, 1], [], []>} : vector<8x108xbf16>, vector<108x512xbf16>, vector<8x512xf32> -> vector<8x512xf32>
    %c0_3 = arith.constant 0 : index
    %c0_4 = arith.constant 0 : index
    %3 = vector.load %arg3[%c0_3, %c0_4] : memref<8x512xf32, #tpu.memory_space<vmem>>, vector<8x512xf32>
    tpu.vector_store %arg3[%c0_3, %c0_4], %2 {strides = array<i32>} : memref<8x512xf32, #tpu.memory_space<vmem>>, vector<8x512xf32>,
    %c0_i32 = arith.constant 0 : i32
    %4 = arith.cmpi eq, %arg0, %c0_i32 : i32
    %5 = arith.extui %4 : i1 to i32
    %c0_i32_5 = arith.constant 0 : i32
    %6 = arith.cmpi ne, %5, %c0_i32_5 : i32
    scf.if %6 {
      %cst_16 = arith.constant 0.000000e+00 : f32
      %18 = vector.broadcast %cst_16 : f32 to vector<8x1xf32>
      %c0_17 = arith.constant 0 : index
      %c0_18 = arith.constant 0 : index
      %19 = vector.load %arg4[%c0_17, %c0_18] : memref<8x1xf32, #tpu.memory_space<vmem>>, vector<8x1xf32>
      tpu.vector_store %arg4[%c0_17, %c0_18], %18 {strides = array<i32>} : memref<8x1xf32, #tpu.memory_space<vmem>>, vector<8x1xf32>,
      %cst_19 = arith.constant 0.000000e+00 : f32
      %20 = vector.broadcast %cst_19 : f32 to vector<8x1xf32>
      %c0_20 = arith.constant 0 : index
      %c0_21 = arith.constant 0 : index
      %21 = vector.load %arg5[%c0_20, %c0_21] : memref<8x1xf32, #tpu.memory_space<vmem>>, vector<8x1xf32>
      tpu.vector_store %arg5[%c0_20, %c0_21], %20 {strides = array<i32>} : memref<8x1xf32, #tpu.memory_space<vmem>>, vector<8x1xf32>,
    } else {
    }
    %c0_6 = arith.constant 0 : index
    %c0_7 = arith.constant 0 : index
    %7 = vector.load %arg4[%c0_6, %c0_7] : memref<8x1xf32, #tpu.memory_space<vmem>>, vector<8x1xf32>
    %cst_8 = arith.constant dense<0.000000e+00> : vector<8xf32>
    %8 = vector.multi_reduction <add>, %2, %cst_8 [1] : vector<8x512xf32> to vector<8xf32>
    %9 = vector.shape_cast %8 : vector<8xf32> to vector<8x1xf32>
    %10 = arith.addf %7, %9 : vector<8x1xf32>
    %c0_9 = arith.constant 0 : index
    %c0_10 = arith.constant 0 : index
    %11 = vector.load %arg4[%c0_9, %c0_10] : memref<8x1xf32, #tpu.memory_space<vmem>>, vector<8x1xf32>
    tpu.vector_store %arg4[%c0_9, %c0_10], %10 {strides = array<i32>} : memref<8x1xf32, #tpu.memory_space<vmem>>, vector<8x1xf32>,
    %c0_11 = arith.constant 0 : index
    %c0_12 = arith.constant 0 : index
    %12 = vector.load %arg5[%c0_11, %c0_12] : memref<8x1xf32, #tpu.memory_space<vmem>>, vector<8x1xf32>
    %13 = arith.mulf %2, %2 : vector<8x512xf32>
    %cst_13 = arith.constant dense<0.000000e+00> : vector<8xf32>
    %14 = vector.multi_reduction <add>, %13, %cst_13 [1] : vector<8x512xf32> to vector<8xf32>
    %15 = vector.shape_cast %14 : vector<8xf32> to vector<8x1xf32>
    %16 = arith.addf %12, %15 : vector<8x1xf32>
    %c0_14 = arith.constant 0 : index
    %c0_15 = arith.constant 0 : index
    %17 = vector.load %arg5[%c0_14, %c0_15] : memref<8x1xf32, #tpu.memory_space<vmem>>, vector<8x1xf32>
    tpu.vector_store %arg5[%c0_14, %c0_15], %16 {strides = array<i32>} : memref<8x1xf32, #tpu.memory_space<vmem>>, vector<8x1xf32>,
    return
  }
  func.func @transform_0(%arg0: i32) -> (i32, i32) {
    %c0_i32 = arith.constant 0 : i32
    %c0_i32_0 = arith.constant 0 : i32
    return %c0_i32, %arg0 : i32, i32
  }
  func.func @transform_1(%arg0: i32) -> (i32, i32) {
    %c0_i32 = arith.constant 0 : i32
    %c0_i32_0 = arith.constant 0 : i32
    %c0_i32_1 = arith.constant 0 : i32
    return %c0_i32, %c0_i32_0 : i32, i32
  }
  func.func @transform_2(%arg0: i32) -> (i32, i32) {
    %c0_i32 = arith.constant 0 : i32
    %c0_i32_0 = arith.constant 0 : i32
    return %c0_i32, %arg0 : i32, i32
  }
  func.func @transform_3(%arg0: i32) -> (i32, i32) {
    %c0_i32 = arith.constant 0 : i32
    %c0_i32_0 = arith.constant 0 : i32
    %c0_i32_1 = arith.constant 0 : i32
    return %c0_i32, %c0_i32_0 : i32, i32
  }
  func.func @transform_4(%arg0: i32) -> (i32, i32) {
    %c0_i32 = arith.constant 0 : i32
    %c0_i32_0 = arith.constant 0 : i32
    %c0_i32_1 = arith.constant 0 : i32
    return %c0_i32, %c0_i32_0 : i32, i32
  }
}

</mosaic_0001>

<bundles_post_ra>
// kernel: tpu_custom_call.1
= control target key start
LH: loop header
LB: loop body
LE: loop exit
PB: predicated region body
PF: predicated region fallthrough
CT: control target
= control target key end

     0   :  { %10 = vsyncpa [#allocation3], 0  ;;  %s1197_s0 = inlined_call_operand.hbm [shape: bf16[108,1024], index: 0, kind: input, shape index: {}]   ;;  %s1198_s1 = inlined_call_operand.hbm [shape: bf16[8,108], index: 1, kind: input, shape index: {}]   ;;  %s1199_s2 = inlined_call_operand.hbm [shape: f32[8,1024], index: 2, kind: output, shape index: {0}]   ;;  %s1200_s3 = inlined_call_operand.vmem [shape: f32[8,1], index: 3, kind: output, shape index: {1}]   ;;  %s1201_s4 = inlined_call_operand.vmem [shape: f32[8,1], index: 4, kind: output, shape index: {2}]  }
   0x1   :  { %12 = vsyncpa [#allocation3 + $0x1], 0 }
   0x2   :  { %13 = vsyncpa [#allocation6], 0 }
   0x3   :  { %14 = vsyncpa [#allocation4], 0 }
   0x4   :  { %16 = vsyncpa [#allocation4 + $0x1], 0  ;;  %s948_s15 = smov 0   ;;  %s950_s16 = smov 0  }
   0x5   :  { %s952_s17 = smov 0   ;;  %s954_s18 = smov 0  }
   0x6 LB: > { %s969_s19 = sadd.s32 4294967295, %s913_s18   ;;  %s630_s20 = sadd.s32 4294967294, %s913_s18   ;;  %s913_s18 = sphi %s954_s18, %s1227_s18   ;;  %s909_s17 = sphi %s952_s17, %s1226_s17   ;;  %s905_s16 = sphi %s950_s16, %s1225_s16   ;;  %s901_s15 = sphi %s948_s15, %s1224_s15  }
   0x7   : > { %s973_s21 = sadd.s32 1, %s913_s18   ;;  %s29_s22 = sadd.s32 1, %s909_s17 }
   0x8   : > { %s26_s23 = ssub.s32 %s913_s18, %s973_s21  ;;  %p36_p0 = scmp.ne.s32.totalorder %s909_s17, %s905_s16 }
   0x9   : > { %p27_p1 = scmp.eq.s32.totalorder %s26_s23, 0  ;;  %p37_p2 = scmp.eq.s32.totalorder %s913_s18, 0 }
   0xa   : > { %p42_p3 = scmp.ne.s32.totalorder %s905_s16, %s901_s15  ;;  %p1202_p4 = scmp.eq.s32.totalorder %s969_s19, 0 }
   0xb   : > { %s985_s24 = scalar_select %p27_p1, %s909_s17, %s29_s22  }
   0xc   : > { %p987_p5 = por %p37_p2, %p36_p0  ;;  %p993_p6 = por %p1202_p4, %p42_p3 }
   0xd   : > { %p87_p7 = scmp.eq.s32.totalorder %s969_s19, 1  ;;  %p93_p8 = scmp.eq.s32.totalorder %s630_s20, 1 }
   0xe   : > { %s1208_s26 = scalar_select %p993_p6, 1, 0 }
   0xf   : > { %p631_p9 = scmp.ge.s32.totalorder %s913_s18, 1  ;;  %p142_p10 = scmp.lt.s32.totalorder %s913_s18, 3 }
  0x10   : > { %p1000_p11 = por %p87_p7, %p36_p0  ;;  %p1004_p12 = por %p93_p8, %p42_p3 }
  0x11   : > { %p1008_p13 = pnand %p631_p9, %p142_p10  ;;  %s915_s30 = smov [#allocation5]  }
  0x12   : > { %s1209_s27 = scalar_select %p1000_p11, 1, 0 }
  0x13   : > { %s1210_s28 = scalar_select %p1004_p12, 1, 0 }
  0x14   : > { %s1211_s29 = scalar_select %p1008_p13, 1, 0 }
  0x15   : > { %p689_p4 = pneg %p1008_p13  ;;  %s155_s5 = sshll.u32 %s915_s30, 4  ;;  %s156_s5 = int_to_ptr.vmem [resolvable:$true] %s155_s5 }
  0x16   : > { %p702_p0 = scmp.lt.s32.totalorder %s913_s18, 2  ;;  %p1212_p7 = scmp.eq.s32.totalorder %s969_s19, 0 }
  0x17   : > { %s166_s7 = sand.u32 1, %s909_s17   ;;  %s785_s12 = scalar_lea.hbm %s1198_s1, 64 }
  0x18   : > { %p1019_p6 = pnand %p689_p4, %p1212_p7  ;;  %p1026_p3 = pnand %p702_p0, %p987_p5 }
  0x19   : > { %s679_s9 = smul.u32 224, %s166_s7  ;;  %p786_p8 = scmp.ne.s32.totalorder %s1198_s1, %s785_s12 }
  0x1a   : > { %s1214_s8 = scalar_select %p1026_p3, 1, 0 }
  0x1b   : > { %p787_p4 = pneg %p1019_p6  ;;  %p792_p5 = scmp.lt.u32.totalorder %s785_s12, %s1198_s1 }
  0x1d   : > { %p788_p9 = pnand %p787_p4, %p786_p8 }
  0x1f   : > { %p789_p10 = pneg %p788_p9 }
  0x21   : > { %p794_p0 = pnand %p792_p5, %p789_p10 }
  0x23   : > { %797 = shalt.err (!%p794_p0)
}
  0x24   : > { %s798_s23 = scalar_lea.vmem %s156_s5, 64  ;;  %p806_p12 = scmp.lt.s32.totalorder %s156_s5, %s156_s5 }
  0x25   : > { %p799_p7 = scmp.ne.s32.totalorder %s156_s5, %s798_s23  ;;  %p807_p11 = scmp.lt.s32.totalorder %s798_s23, %s798_s23 }
  0x27   : > { %p801_p2 = pnand %p799_p7, %p787_p4  ;;  %p808_p13 = por %p807_p11, %p806_p12 }
  0x29   : > { %p802_p1 = pneg %p801_p2 }
  0x2b   : > { %p809_p3 = pnand %p808_p13, %p802_p1 }
  0x2d   : > { %812 = shalt.err (!%p809_p3)
}
  0x2e   : > { %692 = dma.hbm_to_vmem [thread:$0]  (!%p1019_p6), %s1198_s1, 64, %s156_s5, [#allocation6]  }
  0x2f   : > { %s677_s10 = sshll.u32 %s913_s18, 8  ;;  %s170_s11 = scalar_lea.vmem [#allocation2], %s679_s9 }
  0x30   : > { %s177_s12 = sshll.u32 %s170_s11, 4  ;;  %s1050_s20 = scalar_lea.hbm %s1197_s0, %s677_s10  ;;  %s1052_s12 = int_to_ptr.vmem [resolvable:$true] %s177_s12 }
  0x31   : > { %s1054_s6 = scalar_lea.sflag [#allocation3], %s166_s7  ;;  %s813_s22 = scalar_lea.hbm %s1050_s20, 3584 }
  0x32   : > { %p814_p11 = scmp.ne.s32.totalorder %s1050_s20, %s813_s22  ;;  %p1215_p12 = scmp.ne.s32.totalorder %s1214_s8, 0 }
  0x33   : > { %s818_s23 = scalar_lea.hbm %s1197_s0, 7168  ;;  %p819_p2 = scmp.lt.u32.totalorder %s1050_s20, %s1197_s0 }
  0x34   : > { %p815_p6 = pneg %p1215_p12  ;;  %p820_p3 = scmp.lt.u32.totalorder %s818_s23, %s813_s22 }
  0x35   : > { %p822_p4 = scmp.lt.u32.totalorder %s813_s22, %s1050_s20 }
  0x36   : > { %p816_p13 = pnand %p815_p6, %p814_p11  ;;  %p821_p8 = por %p820_p3, %p819_p2 }
  0x38   : > { %p817_p1 = pneg %p816_p13  ;;  %p823_p9 = por %p822_p4, %p821_p8 }
  0x3a   : > { %p824_p10 = pnand %p823_p9, %p817_p1 }
  0x3c   : > { %827 = shalt.err (!%p824_p10)
}
  0x3d   : > { %s828_s7 = scalar_lea.vmem %s1052_s12, 3584  ;;  %s916_s10 = smov [#allocation2]  }
  0x3e   : > { %p829_p5 = scmp.ne.s32.totalorder %s1052_s12, %s828_s7  ;;  %s833_s11 = sshll.u32 %s916_s10, 4  ;;  %s834_s11 = int_to_ptr.vmem [resolvable:$false] %s833_s11 }
  0x3f   : > { %s835_s13 = scalar_lea.vmem %s834_s11, 7168  ;;  %p836_p11 = scmp.lt.s32.totalorder %s1052_s12, %s834_s11 }
  0x40   : > { %p831_p0 = pnand %p829_p5, %p815_p6  ;;  %p837_p13 = scmp.lt.s32.totalorder %s835_s13, %s828_s7 }
  0x42   : > { %p832_p7 = pneg %p831_p0  ;;  %p838_p2 = por %p837_p13, %p836_p11 }
  0x44   : > { %p839_p3 = pnand %p838_p2, %p832_p7 }
  0x46   : > { %842 = shalt.err (!%p839_p3)
}
  0x47   : > { %s917_s14 = smov 512   ;;  %s918_s22 = smov 256  }
  0x48   : > { %s919_s5 = smov 16   ;;  %p1216_p6 = scmp.ne.s32.totalorder %s1211_s29, 0 }
  0x49   : > { %696 = dma.hbm_to_vmem [thread:$0]  (!%p1215_p12), %s1050_s20, 3584, %s1052_s12, %s1054_s6, %s917_s14, %s918_s22, %s919_s5  }
  0x4a   : > { %189 = sbr.rel (%p1216_p6) target bundleno = 485 (0x1e5), region = 28  ;;  %s1085_s9 = sand.u32 (!%p1216_p6), 1, %s905_s16  }
  0x4b   : > { %s680_s23 = smul.u32 (!%p1216_p6), 224, %s1085_s9  ;;  %s192_s25 = scalar_lea.sflag (!%p1216_p6), [#allocation3], %s1085_s9 }
  0x4c   : > { %p1217_p1 = scmp.ne.s32.totalorder (!%p1216_p6), %s1208_s26, 0 }
  0x4d   : > { %s1089_s30 = scalar_lea.vmem (!%p1216_p6), [#allocation2], %s680_s23 }
  0x51   : > { %888 = dma.done.wait (%p1217_p1), %s192_s25, 3584  }
  0x52   : > { %890 = vsyncadd (%p1217_p1), %s192_s25, 4294963712  ;;  %p1218_p12 = scmp.eq.s32.totalorder %s969_s19, 0 }
  0x54   : > { %892 = dma.done.wait (%p1218_p12), [#allocation6], 64   ;;  %p1219_p8 = pmov %p1218_p12 }
  0x55   : > { %v920_v0 = vmov 0   ;;  %v743_v1 = vld [vmem:[%s1089_s30 + $0x4] ss:$16 sps:$4 sm:$0xff]   ;;  %v745_v2 = vld [vmem:[%s1089_s30 + $0xc] ss:$16 sps:$4 sm:$0xff]   ;;  %vm396_vm0 = vcmask 1045504  }
  0x56   : > { %894 = vsyncadd (%p1219_p8), [#allocation6], 4294967232  ;;  %441 = vmatprep.mubr.bf16.mxu0 %v920_v0  ;;  %482 = vmatprep.mubr.bf16.mxu1 %v920_v0  ;;  %v747_v3 = vld [vmem:[%s1089_s30] ss:$16 sps:$4 sm:$0xff]   ;;  %v748_v4 = vld [vmem:[%s1089_s30 + $0x8] ss:$16 sps:$4 sm:$0xff]  }
  0x57   : > { %409 = vmatprep.subr.bf16.mxu0 %v743_v1  ;;  %450 = vmatprep.subr.bf16.mxu1 %v745_v2  ;;  %v749_v5 = vld [vmem:[%s1089_s30 + $0x24] ss:$16 sps:$4 sm:$0xff]   ;;  %v751_v6 = vld [vmem:[%s1089_s30 + $0x2c] ss:$16 sps:$4 sm:$0xff]   ;;  %v753_v7 = vld [vmem:[%s1089_s30 + $0x20] ss:$16 sps:$4 sm:$0xff]  }
  0x58   : > { %410 = vmatpush1.bf16.msra.mxu0 %v747_v3  ;;  %451 = vmatpush1.bf16.msra.mxu1 %v748_v4  ;;  %v754_v8 = vld [vmem:[%s1089_s30 + $0x28] ss:$16 sps:$4 sm:$0xff]   ;;  %v755_v9 = vld [vmem:[%s1089_s30 + $0x44] ss:$16 sps:$4 sm:$0xff]   ;;  %v757_v10 = vld [vmem:[%s1089_s30 + $0x4c] ss:$16 sps:$4 sm:$0xff]  }
  0x59   : > { %411 = vmatprep.subr.bf16.mxu0 %v749_v5  ;;  %452 = vmatprep.subr.bf16.mxu1 %v751_v6  ;;  %v759_v11 = vld [vmem:[%s1089_s30 + $0x40] ss:$16 sps:$4 sm:$0xff]   ;;  %v760_v12 = vld [vmem:[%s1089_s30 + $0x48] ss:$16 sps:$4 sm:$0xff]   ;;  %v761_v13 = vld [vmem:[%s1089_s30 + $0x64] ss:$16 sps:$4 sm:$0xff]  }
  0x5a   : > { %v763_v14 = vld [vmem:[%s1089_s30 + $0x6c] ss:$16 sps:$4 sm:$0xff]   ;;  %v765_v15 = vld [vmem:[%s1089_s30 + $0x60] ss:$16 sps:$4 sm:$0xff]   ;;  %v766_v16 = vld [vmem:[%s1089_s30 + $0x68] ss:$16 sps:$4 sm:$0xff]  }
  0x5b   : > { %v767_v17 = vld [vmem:[%s1089_s30 + $0x84] ss:$16 sps:$4 sm:$0xff]   ;;  %v769_v18 = vld [vmem:[%s1089_s30 + $0x8c] ss:$16 sps:$4 sm:$0xff]   ;;  %v771_v19 = vld [vmem:[%s1089_s30 + $0x80] ss:$16 sps:$4 sm:$0xff]  }
  0x5c   : > { %412 = vmatpush1.bf16.msra.mxu0 %v753_v7  ;;  %453 = vmatpush1.bf16.msra.mxu1 %v754_v8  ;;  %v772_v20 = vld [vmem:[%s1089_s30 + $0x88] ss:$16 sps:$4 sm:$0xff]   ;;  %v773_v21 = vld [vmem:[%s1089_s30 + $0xa4] ss:$16 sps:$4 sm:$0xff]   ;;  %v775_v22 = vld [vmem:[%s1089_s30 + $0xac] ss:$16 sps:$4 sm:$0xff]  }
  0x5d   : > { %413 = vmatprep.subr.bf16.mxu0 %v755_v9  ;;  %454 = vmatprep.subr.bf16.mxu1 %v757_v10  ;;  %v777_v23 = vld [vmem:[%s1089_s30 + $0xa0] ss:$16 sps:$4 sm:$0xff]   ;;  %v778_v24 = vld [vmem:[%s1089_s30 + $0xa8] ss:$16 sps:$4 sm:$0xff]   ;;  %vm392_vm1 = vcmask 883712   ;;  %s638_s26 = sshll.u32 %s1085_s9, 5 }
  0x5e   : > { %v779_v25 = vld [vmem:[%s1089_s30 + $0xc4] ss:$16 sps:$4 sm:$0x3f]   ;;  %v781_v26 = vld [vmem:[%s1089_s30 + $0xcc] ss:$16 sps:$4 sm:$0x3f]  }
  0x5f   : > { %v783_v27 = vld [vmem:[%s1089_s30 + $0xc0] ss:$16 sps:$4 sm:$0x3f]   ;;  %v784_v28 = vld [vmem:[%s1089_s30 + $0xc8] ss:$16 sps:$4 sm:$0x3f]  }
  0x60   : > { %414 = vmatpush1.bf16.msra.mxu0 %v759_v11  ;;  %455 = vmatpush1.bf16.msra.mxu1 %v760_v12  ;;  %v398_v29 = vsel %vm396_vm0, %v783_v27, 0  ;;  %v404_v30 = vsel %vm396_vm0, %v784_v28, 0  ;;  %v227_v31 = vld [vmem:[#allocation5] sm:$0xf]  ;;  %s1128_s29 = scalar_lea.vmem [#allocation7], %s638_s26  ;;  %p1220_p4 = scmp.ne.s32.totalorder %s969_s19, 0 }
  0x61   : > { %415 = vmatprep.subr.bf16.mxu0 %v761_v13  ;;  %456 = vmatprep.subr.bf16.mxu1 %v763_v14  ;;  %vm499_vm2 = vcmask (!%p1220_p4), 7168   ;;  %v921_v40 = vmov (!%p1220_p4), 0.0  }
  0x62   : > { %500 = vst.msk [vmem:[%s1200_s3] sm:$0xff] (!%p1220_p4), %vm499_vm2, %v921_v40  ;;  %501 = vst.msk [vmem:[%s1201_s4] sm:$0xff] (!%p1220_p4), %vm499_vm2, %v921_v40 }
  0x64   : > { %416 = vmatpush1.bf16.msra.mxu0 %v765_v15  ;;  %457 = vmatpush1.bf16.msra.mxu1 %v766_v16 }
  0x65   : > { %417 = vmatprep.subr.bf16.mxu0 %v767_v17  ;;  %458 = vmatprep.subr.bf16.mxu1 %v769_v18 }
  0x68   : > { %418 = vmatpush1.bf16.msra.mxu0 %v771_v19  ;;  %459 = vmatpush1.bf16.msra.mxu1 %v772_v20 }
  0x69   : > { %419 = vmatprep.subr.bf16.mxu0 %v773_v21  ;;  %460 = vmatprep.subr.bf16.mxu1 %v775_v22 }
  0x6c   : > { %420 = vmatpush1.bf16.msra.mxu0 %v777_v23  ;;  %461 = vmatpush1.bf16.msra.mxu1 %v778_v24 }
  0x6d   : > { %667 = vmatprep.subr.msk.bf16.mxu0 %vm396_vm0, %v779_v25  ;;  %669 = vmatprep.subr.msk.bf16.mxu1 %vm396_vm0, %v781_v26 }
  0x70   : > { %422 = vmatpush1.bf16.msra.mxu0 %v398_v29  ;;  %463 = vmatpush1.bf16.msra.mxu1 %v404_v30 }
  0x73   : > { %668 = vmatmul.mubr.msk.bf16.vlgmr.msra.gmra.mrb[0].mxu0 %vm392_vm1, %v227_v31  ;;  %670 = vmatmul.mubr.msk.bf16.vlgmr.msra.gmra.mrb[0].mxu1 %vm392_vm1, %v227_v31 }
 0x143   : > { %498 = sbr.rel (%p1220_p4) target bundleno = 330 (0x14a), region = 40 }
 0x146   : > { %v443_v32 = vpop.f32.mrb[0].mxu0  ;;  %v484_v33 = vpop.f32.mrb[0].mxu1 }
 0x147   : > { %491 = vst [vmem:[%s1128_s29] sm:$0xff] %v443_v32  ;;  %493 = vst [vmem:[%s1128_s29 + $0x10] sm:$0xff] %v484_v33  ;;  %v445_v34 = vpop.f32.mrb[1].mxu0  ;;  %v486_v35 = vpop.f32.mrb[1].mxu1 }
 0x148   : > { %492 = vst [vmem:[%s1128_s29 + $0x8] sm:$0xff] %v445_v34  ;;  %494 = vst [vmem:[%s1128_s29 + $0x18] sm:$0xff] %v486_v35  ;;  %v447_v36 = vpop.f32.mrb[2].mxu0  ;;  %v488_v37 = vpop.f32.mrb[2].mxu1 }
 0x149   : > { %v448_v38 = vpop.f32.mrb[3].mxu0  ;;  %v489_v39 = vpop.f32.mrb[3].mxu1 }
 0x14a PF: > { %v503_v41 = vadd.f32 %v445_v34, %v443_v32  ;;  %v512_v42 = vmul.f32 %v443_v32, %v443_v32  ;;  %v513_v43 = vmul.f32 %v445_v34, %v445_v34  ;;  %v514_v44 = vmul.f32 %v484_v33, %v484_v33  ;;  %s678_s7 = sshll.u32 %s969_s19, 9  ;;  %s538_s10 = sshll.u32 %s1128_s29, 4  ;;  %s539_s10 = int_to_ptr.vmem [resolvable:$true] %s538_s10 }
 0x14b   : > { %v515_v46 = vmul.f32 %v486_v35, %v486_v35  ;;  %s1147_s14 = scalar_lea.hbm %s1199_s2, %s678_s7  ;;  %s524_s22 = scalar_lea.sflag [#allocation4], %s1085_s9 }
 0x14c   : > { %v504_v45 = vadd.f32 %v503_v41, %v484_v33  ;;  %v516_v47 = vadd.f32 %v513_v43, %v512_v42  ;;  %s843_s5 = scalar_lea.vmem %s539_s10, 512  ;;  %p1221_p10 = scmp.ne.s32.totalorder %s1209_s27, 0 }
 0x14d   : > { %p844_p9 = scmp.ne.s32.totalorder %s539_s10, %s843_s5  ;;  %s922_s23 = smov [#allocation7]  }
 0x14e   : > { %v505_v48 = vadd.f32 %v504_v45, %v486_v35  ;;  %v517_v49 = vadd.f32 %v516_v47, %v514_v44  ;;  %s847_s25 = sshll.u32 %s922_s23, 4  ;;  %s848_s25 = int_to_ptr.vmem [resolvable:$false] %s847_s25 }
 0x14f   : > { %p845_p5 = pnand %p844_p9, %p1221_p10  ;;  %s849_s30 = scalar_lea.vmem %s848_s25, 1024 }
 0x150   : > { %506 = vadd.xlane.f32.xlu0 %v505_v48  ;;  %v518_v50 = vadd.f32 %v517_v49, %v515_v46  ;;  %p850_p7 = scmp.lt.s32.totalorder %s539_s10, %s848_s25  ;;  %p851_p11 = scmp.lt.s32.totalorder %s849_s30, %s843_s5 }
 0x151   : > { %p846_p0 = pneg %p845_p5 }
 0x152   : > { %p852_p13 = por %p851_p11, %p850_p7 }
 0x154   : > { %519 = vadd.xlane.f32.xlu0 %v518_v50  ;;  %p853_p2 = pnand %p852_p13, %p846_p0 }
 0x156   : > { %856 = shalt.err (!%p853_p2)
}
 0x157   : > { %s857_s19 = scalar_lea.hbm %s1147_s14, 512  ;;  %s861_s29 = scalar_lea.hbm %s1199_s2, 1024 }
 0x158   : > { %p858_p3 = scmp.ne.s32.totalorder %s1147_s14, %s857_s19  ;;  %p862_p12 = scmp.lt.u32.totalorder %s1147_s14, %s1199_s2 }
 0x159   : > { %p863_p8 = scmp.lt.u32.totalorder %s861_s29, %s857_s19  ;;  %p865_p9 = scmp.lt.u32.totalorder %s857_s19, %s1147_s14 }
 0x15a   : > { %p859_p6 = pnand %p858_p3, %p1221_p10 }
 0x15b   : > { %p864_p4 = por %p863_p8, %p862_p12 }
 0x15c   : > { %p860_p1 = pneg %p859_p6 }
 0x15d   : > { %p866_p5 = por %p865_p9, %p864_p4 }
 0x15f   : > { %p867_p0 = pnand %p866_p5, %p860_p1 }
 0x161   : > { %870 = shalt.err (!%p867_p0)
}
 0x162   : > { %687 = dma.vmem_to_hbm [thread:$0]  (%p1221_p10), %s539_s10, 512, %s1147_s14, %s524_s22   ;;  %v502_v51 = vld [vmem:[%s1200_s3] sm:$0xff]  ;;  %vm509_vm3 = vcmask 7168  }
 0x163   : > { %v511_v54 = vld [vmem:[%s1201_s4] sm:$0xff] }
 0x1dd   : > { %v507_v52 = vpop.xlane.xlu0 %506 }
 0x1de   : > { %v508_v53 = vadd.f32 %v507_v52, %v502_v51 }
 0x1e0   : > { %510 = vst.msk [vmem:[%s1200_s3] sm:$0xff] %vm509_vm3, %v508_v53 }
 0x1e1   : > { %v520_v55 = vpop.xlane.xlu0 %519 }
 0x1e2   : > { %v521_v56 = vadd.f32 %v520_v55, %v511_v54 }
 0x1e4   : > { %522 = vst.msk [vmem:[%s1201_s4] sm:$0xff] %vm509_vm3, %v521_v56 }
 0x1e5 PF: > { %s562_s10 = sand.u32 1, %s901_s15   ;;  %p1222_p10 = scmp.ne.s32.totalorder %s1210_s28, 0 }
 0x1e6   : > { %p1223_p7 = scmp.ge.s32.totalorder %s913_s18, 2  ;;  %s563_s14 = scalar_lea.sflag [#allocation4], %s562_s10 }
 0x1e8   : > { %p698_p11 = pnand %p1223_p7, %p1222_p10 }
 0x1ea   : > { %896 = dma.done.wait (!%p698_p11), %s563_s14, 512  }
 0x1eb   : > { %898 = vsyncadd (!%p698_p11), %s563_s14, 4294966784  ;;  %p19_p13 = scmp.ge.s32.totalorder %s973_s21, 4   ;;  %s1224_s15 = smov %s905_s16 }
 0x1ec   : > { %s1225_s16 = smov %s909_s17  ;;  %s1226_s17 = smov %s985_s24 }
 0x1ed   : > { %s1227_s18 = smov %s973_s21  ;;  %21 = sbr.rel (!%p19_p13) target bundleno = 6 (0x6), region = 97 }
 0x1f4   :  { %568 = vsyncpa [#allocation3], 1 }
 0x1f5   :  { %570 = vsyncpa [#allocation3 + $0x1], 1 }
 0x1f6   :  { %571 = vsyncpa [#allocation6], 1 }
 0x1f7   :  { %572 = vsyncpa [#allocation4], 1 }
 0x1f8   :  { %574 = vsyncpa [#allocation4 + $0x1], 1 }

</bundles_post_ra>
